<compile_context>
chip_gen: v7x
topology: tpu7x:2x2x1
jax: 0.10.0
libtpu: 0.0.40
codegen_flags: <defaults>
</compile_context>

<pallas_src>
import jax
import jax.numpy as jnp
import numpy as np
from jax import lax
from jax.experimental import pallas as pl
from jax.experimental.pallas import tpu as pltpu


def _attn_kernel(xkv_ref, xres_ref, y_ref,
                 wq_ref, bq_ref, wk_ref, bk_ref, wv_ref, bv_ref, gamma_ref,
                 out_ref, attn_ref,
                 k_sc, v_sc):
    """One (batch b, query-tile qt) grid step.

    Block shapes:
      xkv_ref : (1, C, N)   key/value side of x (resident across qt)
      xres_ref: (1, C, TQ)  query columns of x (residual)
      y_ref   : (1, C, TQ)  query columns of y
      wq/wk   : (Cqp, C) bf16      bq/bk : (Cqp, 1) f32
      wv      : (C, C)   bf16      bv    : (C, 1)   f32
      gamma   : (1, 1) f32 in SMEM
      out_ref : (1, C, TQ) f32
      attn_ref: (1, TQ, N) f32
      k_sc    : (Cqp, N) bf16 persistent scratch
      v_sc    : (C, N)   bf16 persistent scratch
    """
    qt = pl.program_id(1)

    # ---- K / V projections: once per batch element, cached in VMEM scratch.
    @pl.when(qt == 0)
    def _():
        x_bf = xkv_ref[0].astype(jnp.bfloat16)                          # (C, N)
        k = jnp.dot(wk_ref[...], x_bf,
                    preferred_element_type=jnp.float32) + bk_ref[...]   # (Cqp, N)
        v = jnp.dot(wv_ref[...], x_bf,
                    preferred_element_type=jnp.float32) + bv_ref[...]   # (C, N)
        k_sc[...] = k.astype(jnp.bfloat16)
        v_sc[...] = v.astype(jnp.bfloat16)

    # ---- Q projection for this query tile: (Cqp, C) @ (C, TQ) -> (Cqp, TQ).
    y_bf = y_ref[0].astype(jnp.bfloat16)
    q = jnp.dot(wq_ref[...], y_bf,
                preferred_element_type=jnp.float32) + bq_ref[...]
    q_bf = q.astype(jnp.bfloat16)

    # ---- energy[i, j] = sum_c q[c, i] * k[c, j]  (contract leading dims; no
    #      transposed copy of k is materialized).
    energy = lax.dot_general(
        q_bf, k_sc[...],
        dimension_numbers=(((0,), (0,)), ((), ())),
        preferred_element_type=jnp.float32)                              # (TQ, N)

    # ---- softmax over keys, f32; reciprocal goes to the otherwise-idle EUP.
    m = jnp.max(energy, axis=-1, keepdims=True)
    e = jnp.exp(energy - m)
    attn = e * pl.reciprocal(jnp.sum(e, axis=-1, keepdims=True), approx=True)
    attn_ref[0] = attn

    # ---- out[c, i] = sum_j v[c, j] * attn[i, j]  (contract trailing dims).
    ctx = lax.dot_general(
        v_sc[...], attn.astype(jnp.bfloat16),
        dimension_numbers=(((1,), (1,)), ((), ())),
        preferred_element_type=jnp.float32)                              # (C, TQ)

    # ---- gamma scale + residual, f32.
    out_ref[0] = gamma_ref[0, 0] * ctx + xres_ref[0]


def _vmem_working_set_bytes(C, N, TQ, Cqp):
    f32, bf16 = 4, 2
    per_step = (C * N * f32            # xkv block
                + 2 * C * TQ * f32     # xres + y blocks
                + C * TQ * f32         # out block
                + TQ * N * f32)        # attention block
    scratch = Cqp * N * bf16 + C * N * bf16
    weights = (2 * Cqp * C + C * C) * bf16 + (2 * Cqp + C) * f32
    return 2 * per_step + scratch + weights            # x2: double buffering


def _pick_query_tile(N, C, Cqp, vmem_budget_bytes):
    # TQ must be a multiple of 128 (lane-dense stores of the (1, C, TQ) out
    # block) or equal to the full row dim N.
    if N <= 128:
        return N
    candidates = [t for t in (1024, 512, 256, 128) if N % t == 0]
    if not candidates:
        # TODO(synk): pad N up to a multiple of 128 (masked softmax) instead of
        # falling back to a full-row tile for awkward spatial sizes.
        return N
    for t in candidates:
        if _vmem_working_set_bytes(C, N, t, Cqp) <= vmem_budget_bytes:
            return t
    return candidates[-1]


def attn_module_pallas(x_nchw, y_nchw, params, *,
                       vmem_budget_bytes=24 * 1024 * 1024):
    """AttnModule forward (efficient=False, pool=False).

    x_nchw, y_nchw: (B, C, W, H) float32.
    Returns (out (B, C, W, H) f32, attention (B, N, N) f32), N = W*H.
    """
    # NOTE: the efficient=True / pool=True branches (adaptive_max_pool2d,
    # max_pool2d, bilinear interpolate) are not on the default forward path
    # and are not implemented here.
    B, C, W, H = x_nchw.shape
    N = W * H
    Cq = params["wq"].shape[0]
    Cqp = ((Cq + 127) // 128) * 128      # pad Cq to a full MXU contraction width

    # channels-first flatten: NCHW -> (B, C, N); no transpose required.
    x3 = x_nchw.reshape(B, C, N)
    y3 = y_nchw.reshape(B, C, N)

    # Zero-pad q/k projection output channels; padded rows of both q and k are
    # exactly zero (zero weight rows, zero bias), so energy is unchanged.
    def _pad_qk(w, b):
        wp = jnp.zeros((Cqp, C), jnp.float32).at[:Cq, :].set(w)
        bp = jnp.zeros((Cqp, 1), jnp.float32).at[:Cq, 0].set(b)
        return wp.astype(jnp.bfloat16), bp

    wq_p, bq_p = _pad_qk(params["wq"], params["bq"])
    wk_p, bk_p = _pad_qk(params["wk"], params["bk"])
    wv = params["wv"].astype(jnp.bfloat16)                   # (C, C)
    bv = params["bv"].reshape(C, 1).astype(jnp.float32)
    gamma = params["gamma"].reshape(1, 1).astype(jnp.float32)

    TQ = _pick_query_tile(N, C, Cqp, vmem_budget_bytes)
    assert N % TQ == 0
    NQ = N // TQ

    full = lambda b, qt: (0, 0)
    grid_spec = pltpu.PrefetchScalarGridSpec(
        num_scalar_prefetch=0,
        grid=(B, NQ),
        in_specs=[
            pl.BlockSpec((1, C, N), lambda b, qt: (b, 0, 0)),    # x for K/V
            pl.BlockSpec((1, C, TQ), lambda b, qt: (b, 0, qt)),  # x residual cols
            pl.BlockSpec((1, C, TQ), lambda b, qt: (b, 0, qt)),  # y query cols
            pl.BlockSpec((Cqp, C), full),                        # wq (bf16)
            pl.BlockSpec((Cqp, 1), full),                        # bq (f32)
            pl.BlockSpec((Cqp, C), full),                        # wk (bf16)
            pl.BlockSpec((Cqp, 1), full),                        # bk (f32)
            pl.BlockSpec((C, C), full),                          # wv (bf16)
            pl.BlockSpec((C, 1), full),                          # bv (f32)
            pl.BlockSpec(memory_space=pltpu.MemorySpace.SMEM),   # gamma scalar
        ],
        out_specs=[
            pl.BlockSpec((1, C, TQ), lambda b, qt: (b, 0, qt)),  # out  (B, C, N)
            pl.BlockSpec((1, TQ, N), lambda b, qt: (b, qt, 0)),  # attn (B, N, N)
        ],
        scratch_shapes=[
            pltpu.VMEM((Cqp, N), jnp.bfloat16),                  # K cache
            pltpu.VMEM((C, N), jnp.bfloat16),                    # V cache
        ],
    )

    compiler_kwargs = dict(
        # batch axis parallel (megacore); query-tile axis stays sequential so
        # the per-batch K/V scratch written at qt == 0 is valid for qt > 0.
        dimension_semantics=("parallel", "arbitrary"))
    est = _vmem_working_set_bytes(C, N, TQ, Cqp)
    if est > 30 * 1024 * 1024:
        # Only relevant for very large N on v5e/v6e (128 MiB VMEM); on v7x pass
        # a smaller vmem_budget_bytes instead so TQ shrinks.
        compiler_kwargs["vmem_limit_bytes"] = int(min(est * 1.4, 100 * 2**20))

    out3, attention = pl.pallas_call(
        _attn_kernel,
        out_shape=(
            jax.ShapeDtypeStruct((B, C, N), jnp.float32),
            jax.ShapeDtypeStruct((B, N, N), jnp.float32),
        ),
        grid_spec=grid_spec,
        compiler_params=pltpu.CompilerParams(**compiler_kwargs),
    )(x3, x3, y3, wq_p, bq_p, wk_p, bk_p, wv, bv, gamma)

    return out3.reshape(B, C, W, H), attention


def attn_module_ref(x_nchw, y_nchw, params):
    """Pure-JAX f32 reference mirroring the PyTorch forward."""
    B, C, W, H = x_nchw.shape
    N = W * H
    x3 = x_nchw.reshape(B, C, N)
    y3 = y_nchw.reshape(B, C, N)
    q = jnp.einsum("oc,bcn->bon", params["wq"], y3) + params["bq"][None, :, None]
    k = jnp.einsum("oc,bcn->bon", params["wk"], x3) + params["bk"][None, :, None]
    v = jnp.einsum("oc,bcn->bon", params["wv"], x3) + params["bv"][None, :, None]
    energy = jnp.einsum("bci,bcj->bij", q, k)
    attn = jax.nn.softmax(energy, axis=-1)
    out = jnp.einsum("bcj,bij->bci", v, attn)
    out = params["gamma"][0] * out + x3
    return out.reshape(B, C, W, H), attn


def init_params(key, C):
    Cq = C // 8
    ks = jax.random.split(key, 6)
    s = 0.1
    return {
        # Conv2d(C, Cq, 1): weight (Cq, C), bias (Cq,)
        "wq": s * jax.random.normal(ks[0], (Cq, C), jnp.float32),
        "bq": s * jax.random.normal(ks[1], (Cq,), jnp.float32),
        "wk": s * jax.random.normal(ks[2], (Cq, C), jnp.float32),
        "bk": s * jax.random.normal(ks[3], (Cq,), jnp.float32),
        "wv": s * jax.random.normal(ks[4], (C, C), jnp.float32),
        "bv": s * jax.random.normal(ks[5], (C,), jnp.float32),
        # nn.Parameter(torch.zeros(1)); use a nonzero value so the attention
        # branch actually contributes to the output under test.
        "gamma": jnp.full((1,), 0.5, jnp.float32),
    }


if __name__ == "__main__":
    B, C, W, H = 2, 16, 8, 8          # C must be a multiple of 8 (Cq = C // 8)
    key = jax.random.PRNGKey(0)
    kx, ky, kp = jax.random.split(key, 3)
    x = jax.random.normal(kx, (B, C, W, H), jnp.float32)
    y = jax.random.normal(ky, (B, C, W, H), jnp.float32)
    params = init_params(kp, C)

    out, attention = attn_module_pallas(x, y, params)
    out = jax.block_until_ready(out)
    attention = jax.block_until_ready(attention)

    out_ref, attn_ref = attn_module_ref(x, y, params)
    # bf16 MXU operands + EUP approximate reciprocal -> bf16-level agreement
    # with the fp32 reference.
    np.testing.assert_allclose(np.asarray(attention), np.asarray(attn_ref),
                               rtol=3e-2, atol=2e-3)
    np.testing.assert_allclose(np.asarray(out), np.asarray(out_ref),
                               rtol=3e-2, atol=1e-2)

    assert out.shape == (B, C, W, H)
    assert attention.shape == (B, W * H, W * H)
    print("KERNEL_OK")
</pallas_src>

<mosaic_0001>
module attributes {stable_mosaic.version = 11 : i64} {
  func.func @_attn_kernel(%arg0: i32, %arg1: i32, %arg2: memref<1x16x64xf32, #tpu.memory_space<vmem>>, %arg3: memref<1x16x64xf32, #tpu.memory_space<vmem>>, %arg4: memref<1x16x64xf32, #tpu.memory_space<vmem>>, %arg5: memref<128x16xbf16, #tpu.memory_space<vmem>>, %arg6: memref<128x1xf32, #tpu.memory_space<vmem>>, %arg7: memref<128x16xbf16, #tpu.memory_space<vmem>>, %arg8: memref<128x1xf32, #tpu.memory_space<vmem>>, %arg9: memref<16x16xbf16, #tpu.memory_space<vmem>>, %arg10: memref<16x1xf32, #tpu.memory_space<vmem>>, %arg11: memref<1x1xf32, #tpu.memory_space<smem>>, %arg12: memref<1x16x64xf32, #tpu.memory_space<vmem>>, %arg13: memref<1x64x64xf32, #tpu.memory_space<vmem>>, %arg14: memref<128x64xbf16, #tpu.memory_space<vmem>>, %arg15: memref<16x64xbf16, #tpu.memory_space<vmem>>) attributes {dimension_semantics = [#tpu.dimension_semantics<parallel>, #tpu.dimension_semantics<arbitrary>], iteration_bounds = array<i64: 2, 1>, scalar_prefetch = 0 : i64, scratch_operands = 2 : i64, tpu.core_type = #tpu.core_type<tc>, window_params = [{transform_indices = @transform_0, window_bounds = array<i64: 1, 16, 64>}, {transform_indices = @transform_1, window_bounds = array<i64: 1, 16, 64>}, {transform_indices = @transform_2, window_bounds = array<i64: 1, 16, 64>}, {pipeline_mode = #tpu.pipeline_mode<synchronous>, transform_indices = @transform_3, window_bounds = array<i64: 128, 16>}, {pipeline_mode = #tpu.pipeline_mode<synchronous>, transform_indices = @transform_4, window_bounds = array<i64: 128, 1>}, {pipeline_mode = #tpu.pipeline_mode<synchronous>, transform_indices = @transform_5, window_bounds = array<i64: 128, 16>}, {pipeline_mode = #tpu.pipeline_mode<synchronous>, transform_indices = @transform_6, window_bounds = array<i64: 128, 1>}, {pipeline_mode = #tpu.pipeline_mode<synchronous>, transform_indices = @transform_7, window_bounds = array<i64: 16, 16>}, {pipeline_mode = #tpu.pipeline_mode<synchronous>, transform_indices = @transform_8, window_bounds = array<i64: 16, 1>}, {transform_indices = @transform_9, window_bounds = array<i64: 1, 1>}, {transform_indices = @transform_10, window_bounds = array<i64: 1, 16, 64>}, {transform_indices = @transform_11, window_bounds = array<i64: 1, 64, 64>}]} {
    %c0_i32 = arith.constant 0 : i32
    %0 = arith.cmpi eq, %arg1, %c0_i32 : i32
    %1 = arith.extui %0 : i1 to i32
    %c0_i32_0 = arith.constant 0 : i32
    %2 = arith.cmpi ne, %1, %c0_i32_0 : i32
    scf.if %2 {
      %c0_26 = arith.constant 0 : index
      %c0_27 = arith.constant 0 : index
      %c0_28 = arith.constant 0 : index
      %39 = vector.load %arg2[%c0_26, %c0_27, %c0_28] : memref<1x16x64xf32, #tpu.memory_space<vmem>>, vector<1x16x64xf32>
      %40 = vector.shape_cast %39 : vector<1x16x64xf32> to vector<16x64xf32>
      %41 = arith.truncf %40 : vector<16x64xf32> to vector<16x64xbf16>
      %c0_29 = arith.constant 0 : index
      %c0_30 = arith.constant 0 : index
      %42 = vector.load %arg7[%c0_29, %c0_30] : memref<128x16xbf16, #tpu.memory_space<vmem>>, vector<128x16xbf16>
      %cst_31 = arith.constant dense<0.000000e+00> : vector<128x64xf32>
      %43 = tpu.matmul %42, %41, %cst_31 {dimension_numbers = #tpu.dot_dimension_numbers<[1], [0], [0], [1], [0, 0, 1, 1], [], []>} : vector<128x16xbf16>, vector<16x64xbf16>, vector<128x64xf32> -> vector<128x64xf32>
      %c0_32 = arith.constant 0 : index
      %c0_33 = arith.constant 0 : index
      %44 = vector.load %arg8[%c0_32, %c0_33] : memref<128x1xf32, #tpu.memory_space<vmem>>, vector<128x1xf32>
      %45 = vector.broadcast %44 : vector<128x1xf32> to vector<128x64xf32>
      %46 = arith.addf %43, %45 : vector<128x64xf32>
      %c0_34 = arith.constant 0 : index
      %c0_35 = arith.constant 0 : index
      %47 = vector.load %arg9[%c0_34, %c0_35] : memref<16x16xbf16, #tpu.memory_space<vmem>>, vector<16x16xbf16>
      %cst_36 = arith.constant dense<0.000000e+00> : vector<16x64xf32>
      %48 = tpu.matmul %47, %41, %cst_36 {dimension_numbers = #tpu.dot_dimension_numbers<[1], [0], [0], [1], [0, 0, 1, 1], [], []>} : vector<16x16xbf16>, vector<16x64xbf16>, vector<16x64xf32> -> vector<16x64xf32>
      %c0_37 = arith.constant 0 : index
      %c0_38 = arith.constant 0 : index
      %49 = vector.load %arg10[%c0_37, %c0_38] : memref<16x1xf32, #tpu.memory_space<vmem>>, vector<16x1xf32>
      %50 = vector.broadcast %49 : vector<16x1xf32> to vector<16x64xf32>
      %51 = arith.addf %48, %50 : vector<16x64xf32>
      %52 = arith.truncf %46 : vector<128x64xf32> to vector<128x64xbf16>
      %c0_39 = arith.constant 0 : index
      %c0_40 = arith.constant 0 : index
      %53 = vector.load %arg14[%c0_39, %c0_40] : memref<128x64xbf16, #tpu.memory_space<vmem>>, vector<128x64xbf16>
      tpu.vector_store %arg14[%c0_39, %c0_40], %52 {strides = array<i32>} : memref<128x64xbf16, #tpu.memory_space<vmem>>, vector<128x64xbf16>,
      %54 = arith.truncf %51 : vector<16x64xf32> to vector<16x64xbf16>
      %c0_41 = arith.constant 0 : index
      %c0_42 = arith.constant 0 : index
      %55 = vector.load %arg15[%c0_41, %c0_42] : memref<16x64xbf16, #tpu.memory_space<vmem>>, vector<16x64xbf16>
      tpu.vector_store %arg15[%c0_41, %c0_42], %54 {strides = array<i32>} : memref<16x64xbf16, #tpu.memory_space<vmem>>, vector<16x64xbf16>,
    } else {
    }
    %c0 = arith.constant 0 : index
    %c0_1 = arith.constant 0 : index
    %c0_2 = arith.constant 0 : index
    %3 = vector.load %arg4[%c0, %c0_1, %c0_2] : memref<1x16x64xf32, #tpu.memory_space<vmem>>, vector<1x16x64xf32>
    %4 = vector.shape_cast %3 : vector<1x16x64xf32> to vector<16x64xf32>
    %5 = arith.truncf %4 : vector<16x64xf32> to vector<16x64xbf16>
    %c0_3 = arith.constant 0 : index
    %c0_4 = arith.constant 0 : index
    %6 = vector.load %arg5[%c0_3, %c0_4] : memref<128x16xbf16, #tpu.memory_space<vmem>>, vector<128x16xbf16>
    %cst = arith.constant dense<0.000000e+00> : vector<128x64xf32>
    %7 = tpu.matmul %6, %5, %cst {dimension_numbers = #tpu.dot_dimension_numbers<[1], [0], [0], [1], [0, 0, 1, 1], [], []>} : vector<128x16xbf16>, vector<16x64xbf16>, vector<128x64xf32> -> vector<128x64xf32>
    %c0_5 = arith.constant 0 : index
    %c0_6 = arith.constant 0 : index
    %8 = vector.load %arg6[%c0_5, %c0_6] : memref<128x1xf32, #tpu.memory_space<vmem>>, vector<128x1xf32>
    %9 = vector.broadcast %8 : vector<128x1xf32> to vector<128x64xf32>
    %10 = arith.addf %7, %9 : vector<128x64xf32>
    %11 = arith.truncf %10 : vector<128x64xf32> to vector<128x64xbf16>
    %c0_7 = arith.constant 0 : index
    %c0_8 = arith.constant 0 : index
    %12 = vector.load %arg14[%c0_7, %c0_8] : memref<128x64xbf16, #tpu.memory_space<vmem>>, vector<128x64xbf16>
    %cst_9 = arith.constant dense<0.000000e+00> : vector<64x64xf32>
    %13 = tpu.matmul %11, %12, %cst_9 {dimension_numbers = #tpu.dot_dimension_numbers<[0], [0], [1], [1], [0, 1, 1, 1], [], []>} : vector<128x64xbf16>, vector<128x64xbf16>, vector<64x64xf32> -> vector<64x64xf32>
    %cst_10 = arith.constant dense<0xFF800000> : vector<64xf32>
    %14 = vector.multi_reduction <maximumf>, %13, %cst_10 [1] : vector<64x64xf32> to vector<64xf32>
    %15 = vector.shape_cast %14 : vector<64xf32> to vector<64x1xf32>
    %16 = vector.broadcast %15 : vector<64x1xf32> to vector<64x64xf32>
    %17 = arith.subf %13, %16 : vector<64x64xf32>
    %18 = math.exp %17 : vector<64x64xf32>
    %cst_11 = arith.constant dense<0.000000e+00> : vector<64xf32>
    %19 = vector.multi_reduction <add>, %18, %cst_11 [1] : vector<64x64xf32> to vector<64xf32>
    %20 = vector.shape_cast %19 : vector<64xf32> to vector<64x1xf32>
    %21 = tpu.reciprocal %20 {approx = true} : vector<64x1xf32> -> vector<64x1xf32>
    %22 = vector.broadcast %21 : vector<64x1xf32> to vector<64x64xf32>
    %23 = arith.mulf %18, %22 : vector<64x64xf32>
    %c0_12 = arith.constant 0 : index
    %c0_13 = arith.constant 0 : index
    %c0_14 = arith.constant 0 : index
    %24 = vector.load %arg13[%c0_12, %c0_13, %c0_14] : memref<1x64x64xf32, #tpu.memory_space<vmem>>, vector<1x64x64xf32>
    %25 = vector.shape_cast %24 : vector<1x64x64xf32> to vector<64x64xf32>
    %26 = vector.shape_cast %23 : vector<64x64xf32> to vector<1x64x64xf32>
    tpu.vector_store %arg13[%c0_12, %c0_13, %c0_14], %26 {strides = array<i32>} : memref<1x64x64xf32, #tpu.memory_space<vmem>>, vector<1x64x64xf32>,
    %c0_15 = arith.constant 0 : index
    %c0_16 = arith.constant 0 : index
    %27 = vector.load %arg15[%c0_15, %c0_16] : memref<16x64xbf16, #tpu.memory_space<vmem>>, vector<16x64xbf16>
    %28 = arith.truncf %23 : vector<64x64xf32> to vector<64x64xbf16>
    %cst_17 = arith.constant dense<0.000000e+00> : vector<16x64xf32>
    %29 = tpu.matmul %27, %28, %cst_17 {dimension_numbers = #tpu.dot_dimension_numbers<[1], [1], [0], [0], [0, 0, 1, 0], [], []>} : vector<16x64xbf16>, vector<64x64xbf16>, vector<16x64xf32> -> vector<16x64xf32>
    %c0_18 = arith.constant 0 : index
    %c0_19 = arith.constant 0 : index
    %30 = memref.load %arg11[%c0_18, %c0_19] : memref<1x1xf32, #tpu.memory_space<smem>>
    %31 = vector.broadcast %30 : f32 to vector<16x64xf32>
    %32 = arith.mulf %31, %29 : vector<16x64xf32>
    %c0_20 = arith.constant 0 : index
    %c0_21 = arith.constant 0 : index
    %c0_22 = arith.constant 0 : index
    %33 = vector.load %arg3[%c0_20, %c0_21, %c0_22] : memref<1x16x64xf32, #tpu.memory_space<vmem>>, vector<1x16x64xf32>
    %34 = vector.shape_cast %33 : vector<1x16x64xf32> to vector<16x64xf32>
    %35 = arith.addf %32, %34 : vector<16x64xf32>
    %c0_23 = arith.constant 0 : index
    %c0_24 = arith.constant 0 : index
    %c0_25 = arith.constant 0 : index
    %36 = vector.load %arg12[%c0_23, %c0_24, %c0_25] : memref<1x16x64xf32, #tpu.memory_space<vmem>>, vector<1x16x64xf32>
    %37 = vector.shape_cast %36 : vector<1x16x64xf32> to vector<16x64xf32>
    %38 = vector.shape_cast %35 : vector<16x64xf32> to vector<1x16x64xf32>
    tpu.vector_store %arg12[%c0_23, %c0_24, %c0_25], %38 {strides = array<i32>} : memref<1x16x64xf32, #tpu.memory_space<vmem>>, vector<1x16x64xf32>,
    return
  }
  func.func @transform_0(%arg0: i32, %arg1: i32) -> (i32, i32, i32) {
    %c0_i32 = arith.constant 0 : i32
    %c0_i32_0 = arith.constant 0 : i32
    %c0_i32_1 = arith.constant 0 : i32
    return %arg0, %c0_i32, %c0_i32_0 : i32, i32, i32
  }
  func.func @transform_1(%arg0: i32, %arg1: i32) -> (i32, i32, i32) {
    %c0_i32 = arith.constant 0 : i32
    %c0_i32_0 = arith.constant 0 : i32
    return %arg0, %c0_i32, %arg1 : i32, i32, i32
  }
  func.func @transform_2(%arg0: i32, %arg1: i32) -> (i32, i32, i32) {
    %c0_i32 = arith.constant 0 : i32
    %c0_i32_0 = arith.constant 0 : i32
    return %arg0, %c0_i32, %arg1 : i32, i32, i32
  }
  func.func @transform_3(%arg0: i32, %arg1: i32) -> (i32, i32) {
    %c0_i32 = arith.constant 0 : i32
    %c0_i32_0 = arith.constant 0 : i32
    %c0_i32_1 = arith.constant 0 : i32
    return %c0_i32, %c0_i32_0 : i32, i32
  }
  func.func @transform_4(%arg0: i32, %arg1: i32) -> (i32, i32) {
    %c0_i32 = arith.constant 0 : i32
    %c0_i32_0 = arith.constant 0 : i32
    %c0_i32_1 = arith.constant 0 : i32
    return %c0_i32, %c0_i32_0 : i32, i32
  }
  func.func @transform_5(%arg0: i32, %arg1: i32) -> (i32, i32) {
    %c0_i32 = arith.constant 0 : i32
    %c0_i32_0 = arith.constant 0 : i32
    %c0_i32_1 = arith.constant 0 : i32
    return %c0_i32, %c0_i32_0 : i32, i32
  }
  func.func @transform_6(%arg0: i32, %arg1: i32) -> (i32, i32) {
    %c0_i32 = arith.constant 0 : i32
    %c0_i32_0 = arith.constant 0 : i32
    %c0_i32_1 = arith.constant 0 : i32
    return %c0_i32, %c0_i32_0 : i32, i32
  }
  func.func @transform_7(%arg0: i32, %arg1: i32) -> (i32, i32) {
    %c0_i32 = arith.constant 0 : i32
    %c0_i32_0 = arith.constant 0 : i32
    %c0_i32_1 = arith.constant 0 : i32
    return %c0_i32, %c0_i32_0 : i32, i32
  }
  func.func @transform_8(%arg0: i32, %arg1: i32) -> (i32, i32) {
    %c0_i32 = arith.constant 0 : i32
    %c0_i32_0 = arith.constant 0 : i32
    %c0_i32_1 = arith.constant 0 : i32
    return %c0_i32, %c0_i32_0 : i32, i32
  }
  func.func @transform_9(%arg0: i32, %arg1: i32) -> (i32, i32) {
    %c0_i32 = arith.constant 0 : i32
    %c0_i32_0 = arith.constant 0 : i32
    %c0_i32_1 = arith.constant 0 : i32
    return %c0_i32, %c0_i32_0 : i32, i32
  }
  func.func @transform_10(%arg0: i32, %arg1: i32) -> (i32, i32, i32) {
    %c0_i32 = arith.constant 0 : i32
    %c0_i32_0 = arith.constant 0 : i32
    return %arg0, %c0_i32, %arg1 : i32, i32, i32
  }
  func.func @transform_11(%arg0: i32, %arg1: i32) -> (i32, i32, i32) {
    %c0_i32 = arith.constant 0 : i32
    %c0_i32_0 = arith.constant 0 : i32
    return %arg0, %arg1, %c0_i32 : i32, i32, i32
  }
}

</mosaic_0001>

<bundles_post_ra>
// kernel: tpu_custom_call.1
= control target key start
LH: loop header
LB: loop body
LE: loop exit
PB: predicated region body
PF: predicated region fallthrough
CT: control target
= control target key end

     0   :  { %s2483_s0 = inlined_call_operand.vmem [shape: f32[2,16,64], index: 0, kind: input, shape index: {}]   ;;  %s2484_s1 = inlined_call_operand.vmem [shape: f32[2,16,64], index: 1, kind: input, shape index: {}]   ;;  %s2485_s2 = inlined_call_operand.vmem [shape: f32[2,16,64], index: 2, kind: input, shape index: {}]   ;;  %s2486_s3 = inlined_call_operand.vmem [shape: bf16[128,16], index: 3, kind: input, shape index: {}]   ;;  %s2487_s4 = inlined_call_operand.vmem [shape: f32[128,1], index: 4, kind: input, shape index: {}]   ;;  %s2488_s5 = inlined_call_operand.vmem [shape: bf16[128,16], index: 5, kind: input, shape index: {}]   ;;  %s2489_s6 = inlined_call_operand.vmem [shape: f32[128,1], index: 6, kind: input, shape index: {}]   ;;  %s2490_s7 = inlined_call_operand.vmem [shape: bf16[16,16], index: 7, kind: input, shape index: {}]   ;;  %s2491_s8 = inlined_call_operand.vmem [shape: f32[16,1], index: 8, kind: input, shape index: {}]   ;;  %s2492_s9 = inlined_call_operand.<no memory space> [shape: f32[1,1], index: 9, kind: input, shape index: {}]   ;;  %s2493_s10 = inlined_call_operand.hbm [shape: f32[2,16,64], index: 10, kind: output, shape index: {0}]   ;;  %s2494_s11 = inlined_call_operand.hbm [shape: f32[2,64,64], index: 11, kind: output, shape index: {1}]  }
   0x1   :  { %2495 = sst [smem:[#allocation11_spill]] %s2483_s0 }
   0x2   :  { %2496 = sst [smem:[#allocation12_spill]] %s2485_s2 }
   0x3   :  { %2497 = sst [smem:[#allocation13_spill]] %s2486_s3 }
   0x4   :  { %2498 = sst [smem:[#allocation14_spill]] %s2487_s4 }
   0x5   :  { %2499 = sst [smem:[#allocation15_spill]] %s2490_s7 }
   0x6   :  { %17 = sst [smem:[#allocation4]] %s2492_s9 }
   0x7   :  { %18 = vsyncpa [#allocation6], 0 }
   0x8   :  { %20 = vsyncpa [#allocation6 + $0x1], 0 }
   0x9   :  { %21 = vsyncpa [#allocation8], 0 }
   0xa   :  { %23 = vsyncpa [#allocation8 + $0x1], 0  ;;  %s2037_s19 = smov 0   ;;  %s2039_s20 = smov 0  }
   0xb   :  { %s2041_s21 = smov 0   ;;  %s2043_s22 = smov 0  }
   0xc   :  { %s2045_s23 = smov 0   ;;  %s2047_s24 = smov 0  }
   0xd LB: > { %s1563_s9 = sadd.s32 4294967295, %s1965_s24   ;;  %s1564_s25 = sadd.s32 4294967294, %s1965_s24   ;;  %s1965_s24 = sphi %s2047_s24, %s29_s24   ;;  %s1961_s23 = sphi %s2045_s23, %s2511_s23   ;;  %s1957_s22 = sphi %s2043_s22, %s2510_s22   ;;  %s1953_s21 = sphi %s2041_s21, %s2509_s21   ;;  %s1949_s20 = sphi %s2039_s20, %s2508_s20   ;;  %s1945_s19 = sphi %s2037_s19, %s2507_s19  }
   0xe   : > { %s41_s26 = sadd.s32 1, %s1961_s23  ;;  %s279_s27 = sadd.s32 1, %s1953_s21 }
   0xf   : > { %p43_p0 = scmp.ge.s32.totalorder %s41_s26, 2  ;;  %p289_p1 = scmp.ne.s32.totalorder %s1953_s21, %s1949_s20 }
  0x10   : > { %p290_p2 = scmp.eq.s32.totalorder %s1563_s9, 1  ;;  %p295_p3 = scmp.ne.s32.totalorder %s1949_s20, %s1945_s19 }
  0x11   : > { %s2513_s26 = smov (%p43_p0, %s41_s26), 0  ;;  %p296_p5 = scmp.eq.s32.totalorder %s1564_s25, 1 }
  0x12   : > { %p2077_p4 = por %p290_p2, %p289_p1  ;;  %s274_s29 = ssub.s32 %s1961_s23, %s2513_s26 }
  0x13   : > { %p1567_p6 = scmp.ge.s32.totalorder %s1965_s24, 1  ;;  %p277_p7 = scmp.eq.s32.totalorder %s274_s29, 0 }
  0x14   : > { %p2084_p8 = por %p296_p5, %p295_p3  ;;  %p393_p9 = scmp.lt.s32.totalorder %s1965_s24, 3 }
  0x15   : > { %s2090_s12 = scalar_select %p277_p7, %s1953_s21, %s279_s27  }
  0x16   : > { %p394_p10 = pnand %p1567_p6, %p393_p9 }
  0x17   : > { %p454_p11 = scmp.lt.s32.totalorder (!%p394_p10), %s1957_s22, 1  ;;  %v1806_v0 = vld [vmem:[%s2488_s5] sm:$0xff] (!%p394_p10)   ;;  %v1967_v1 = vmov (!%p394_p10), 0.0   ;;  %vm1968_vm0 = vmmov (!%p394_p10), 0   ;;  %vm636_vm1 = vcmask (!%p394_p10), 130048   ;;  %s2502_s0 = sld [smem:[#allocation11_spill]] (!%p394_p10) }
  0x18   : > { %397 = sbr.rel (%p394_p10) target bundleno = 1185 (0x4a1), region = 60  ;;  %1679 = vmatprep.subr.bf16.mxu1 (!%p394_p10), %v1967_v1  ;;  %1681 = vmatprep.mubr.msk.bf16.mxu1 (!%p394_p10), %vm1968_vm0, %v1967_v1  ;;  %s2503_s2 = sld [smem:[#allocation12_spill]] (!%p394_p10)  ;;  %v1969_v5 = vmov (!%p394_p10), 0   ;;  %v1808_v10 = vld [vmem:[%s2488_s5 + $0x8] sm:$0xff] (!%p394_p10)   ;;  %v1810_v12 = vld [vmem:[%s2488_s5 + $0x10] sm:$0xff] (!%p394_p10)   ;;  %v1812_v14 = vld [vmem:[%s2488_s5 + $0x18] sm:$0xff] (!%p394_p10)  }
  0x19   : > { %1663 = vmatprep.mubr.msk.bf16.mxu0 (!%p394_p10), %vm636_vm1, %v1806_v0  ;;  %1805 = vset.pattern.permute.xlu1 (!%p394_p10), %v1969_v5  ;;  %s2504_s7 = sld [smem:[#allocation15_spill]] (!%p394_p10)  ;;  %s2505_s3 = sld [smem:[#allocation13_spill]] (!%p394_p10)  ;;  %v1814_v18 = vld [vmem:[%s2488_s5 + $0x20] sm:$0xff] (!%p394_p10)   ;;  %v1816_v24 = vld [vmem:[%s2488_s5 + $0x28] sm:$0xff] (!%p394_p10)   ;;  %v1818_v26 = vld [vmem:[%s2488_s5 + $0x30] sm:$0xff] (!%p394_p10)   ;;  %vm829_vm2 = vcmask (!%p394_p10), 523264  }
  0x1a   : > { %1804 = vset.pattern.permute.xlu0 (!%p394_p10), %v1969_v5  ;;  %s2506_s4 = sld [smem:[#allocation14_spill]] (!%p394_p10)  ;;  %v1820_v32 = vld [vmem:[%s2488_s5 + $0x38] sm:$0xff] (!%p394_p10)   ;;  %v501_v39 = vld [vmem:[%s2489_s6 + $0x8] sm:$0xff] (!%p394_p10)  ;;  %v500_v40 = vld [vmem:[%s2489_s6] sm:$0xff] (!%p394_p10)  ;;  %s1623_s13 = sshll.u32 (!%p394_p10), %s1957_s22, 10 }
  0x1b   : > { %v503_v43 = vld [vmem:[%s2489_s6 + $0x18] sm:$0xff] (!%p394_p10)  ;;  %v502_v44 = vld [vmem:[%s2489_s6 + $0x10] sm:$0xff] (!%p394_p10)  ;;  %v505_v45 = vld [vmem:[%s2489_s6 + $0x28] sm:$0xff] (!%p394_p10)  ;;  %s2387_s17 = scalar_lea.hbm (!%p394_p10), %s2494_s11, %s1623_s13 }
  0x1c   : > { %v504_v46 = vld [vmem:[%s2489_s6 + $0x20] sm:$0xff] (!%p394_p10)  ;;  %v507_v47 = vld [vmem:[%s2489_s6 + $0x38] sm:$0xff] (!%p394_p10)  ;;  %v506_v48 = vld [vmem:[%s2489_s6 + $0x30] sm:$0xff] (!%p394_p10) }
  0x1d   : > { %v509_v49 = vld [vmem:[%s2489_s6 + $0x48] sm:$0xff] (!%p394_p10)  ;;  %v508_v50 = vld [vmem:[%s2489_s6 + $0x40] sm:$0xff] (!%p394_p10)  ;;  %v511_v51 = vld [vmem:[%s2489_s6 + $0x58] sm:$0xff] (!%p394_p10) }
  0x1e   : > { %v510_v52 = vld [vmem:[%s2489_s6 + $0x50] sm:$0xff] (!%p394_p10)  ;;  %v513_v53 = vld [vmem:[%s2489_s6 + $0x68] sm:$0xff] (!%p394_p10)  ;;  %v512_v54 = vld [vmem:[%s2489_s6 + $0x60] sm:$0xff] (!%p394_p10) }
  0x1f   : > { %s455_s15 = scalar_select %p454_p11, %s1957_s22, 1  ;;  %v1807_v7 = vld [vmem:[%s2504_s7] sm:$0xff]   ;;  %v1811_v13 = vld [vmem:[%s2505_s3 + $0x8] sm:$0xff]   ;;  %v1813_v15 = vld [vmem:[%s2505_s3 + $0x10] sm:$0xff]  }
  0x20   : > { %v1809_v11 = vld [vmem:[%s2505_s3] sm:$0xff]   ;;  %v861_v16 = vld [vmem:[%s2506_s4 + $0x10] sm:$0xff]  ;;  %v862_v19 = vld [vmem:[%s2506_s4 + $0x18] sm:$0xff] }
  0x21   : > { %s2101_s16 = sshll.u32 %s455_s15, 4  ;;  %887 = vperm.xlu1 %1805, %v861_v16   ;;  %v859_v17 = vld [vmem:[%s2506_s4] sm:$0xff]  ;;  %v860_v20 = vld [vmem:[%s2506_s4 + $0x8] sm:$0xff]  ;;  %v1815_v22 = vld [vmem:[%s2505_s3 + $0x18] sm:$0xff]  }
  0x22   : > { %s458_s9 = scalar_lea.vmem %s2502_s0, %s2101_s16  ;;  %s474_s29 = scalar_lea.vmem %s2503_s2, %s2101_s16  ;;  %877 = vperm.xlu0 %1804, %v859_v17   ;;  %v864_v21 = vld [vmem:[%s2506_s4 + $0x28] sm:$0xff]  ;;  %v863_v23 = vld [vmem:[%s2506_s4 + $0x20] sm:$0xff]  ;;  %v866_v27 = vld [vmem:[%s2506_s4 + $0x38] sm:$0xff] }
  0x23   : > { %v481_v2 = vld [vmem:[%s458_s9] sm:$0xff]  ;;  %v482_v3 = vld [vmem:[%s458_s9 + $0x8] sm:$0xff]  ;;  %v865_v28 = vld [vmem:[%s2506_s4 + $0x30] sm:$0xff]  ;;  %s2351_s2 = sand.u32 1, %s1949_s20   ;;  %s1970_s9 = smov [#allocation7]  }
  0x24   : > { %v840_v4 = vld [vmem:[%s474_s29] sm:$0xff]  ;;  %v483_v6 = vpack.c.bf16 %v482_v3, %v481_v2  ;;  %v841_v8 = vld [vmem:[%s474_s29 + $0x8] sm:$0xff]  ;;  %v1821_v33 = vld [vmem:[%s2505_s3 + $0x30] sm:$0xff]   ;;  %s1569_s7 = sshll.u32 %s2351_s2, 6  ;;  %s1388_s0 = scalar_lea.sflag [#allocation8], %s2351_s2 }
  0x25   : > { %v842_v9 = vpack.c.bf16 %v841_v8, %v840_v4  ;;  %892 = vperm.xlu1 %1805, %v862_v19   ;;  %v1817_v25 = vld [vmem:[%s2505_s3 + $0x20] sm:$0xff]   ;;  %v868_v29 = vld [vmem:[%s2506_s4 + $0x48] sm:$0xff]  ;;  %v870_v34 = vld [vmem:[%s2506_s4 + $0x58] sm:$0xff]  ;;  %s2354_s29 = scalar_lea.vmem [#allocation7], %s1569_s7  ;;  %s1859_s27 = sshll.u32 %s1970_s9, 4  ;;  %s1860_s27 = int_to_ptr.vmem [resolvable:$false] %s1859_s27 }
  0x26   : > { %1661 = vmatprep.subr.bf16.mxu0 %v483_v6  ;;  %1680 = vmatpush3.bf16.msra.mxu1 %v483_v6  ;;  %v1819_v30 = vld [vmem:[%s2505_s3 + $0x28] sm:$0xff]   ;;  %v867_v31 = vld [vmem:[%s2506_s4 + $0x40] sm:$0xff]  ;;  %v869_v35 = vld [vmem:[%s2506_s4 + $0x50] sm:$0xff]  ;;  %s1420_s18 = sshll.u32 %s2354_s29, 4  ;;  %s1861_s7 = scalar_lea.vmem %s1860_s27, 2048  ;;  %s2390_s18 = int_to_ptr.vmem [resolvable:$true] %s1420_s18 }
  0x27   : > { %1662 = vmatpush3.bf16.msra.mxu0 %v483_v6  ;;  %1685 = vmatprep.subr.bf16.mxu1 %v842_v9  ;;  %v872_v36 = vld [vmem:[%s2506_s4 + $0x68] sm:$0xff]  ;;  %v1822_v37 = vld [vmem:[%s2505_s3 + $0x38] sm:$0xff]   ;;  %v871_v38 = vld [vmem:[%s2506_s4 + $0x60] sm:$0xff]  ;;  %s1855_s25 = scalar_lea.vmem %s2390_s18, 1024  ;;  %p1862_p1 = scmp.lt.s32.totalorder %s2390_s18, %s1860_s27 }
  0x28   : > { %882 = vperm.xlu0 %1804, %v860_v20   ;;  %v874_v41 = vld [vmem:[%s2506_s4 + $0x78] sm:$0xff]  ;;  %v873_v42 = vld [vmem:[%s2506_s4 + $0x70] sm:$0xff]  ;;  %p1856_p12 = scmp.ne.s32.totalorder %s2390_s18, %s1855_s25  ;;  %p1863_p2 = scmp.lt.s32.totalorder %s1861_s7, %s1855_s25 }
  0x29   : > { %1682 = vmatmul.mubr.msk.bf16.vlgmr.msra.gmra.mrb[0].mxu1 %vm636_vm1, %v1807_v7  ;;  %902 = vperm.xlu1 %1805, %v864_v21   ;;  %v515_v55 = vld [vmem:[%s2489_s6 + $0x78] sm:$0xff]  ;;  %v514_v56 = vld [vmem:[%s2489_s6 + $0x70] sm:$0xff] }
  0x2a   : > { %1664 = vmatmul.mubr.msk.bf16.vlgmr.msra.gmra.mrb[0].mxu0 %vm636_vm1, %v1808_v10  ;;  %1686 = vmatpush3.bf16.msra.mxu1 %v842_v9  ;;  %p1857_p13 = pnand %p1856_p12, %p2077_p4  ;;  %p1864_p3 = por %p1863_p2, %p1862_p1 }
  0x2b   : > { %1687 = vmatprep.mubr.msk.bf16.mxu1 %vm636_vm1, %v1809_v11  ;;  %1667 = vmatprep.mubr.msk.bf16.mxu0 %vm636_vm1, %v1810_v12 }
  0x2c   : > { %1727 = vmatprep.subr.bf16.mxu1 %v1967_v1  ;;  %897 = vperm.xlu0 %1804, %v863_v23   ;;  %p1858_p0 = pneg %p1857_p13 }
  0x2d   : > { %912 = vperm.xlu1 %1805, %v866_v27  }
  0x2e   : > { %p1865_p5 = pnand %p1864_p3, %p1858_p0 }
  0x30   : > { %907 = vperm.xlu0 %1804, %v865_v28  }
  0x31   : > { %1688 = vmatmul.mubr.msk.bf16.vlgmr.msra.gmra.mrb[4].mxu1 %vm636_vm1, %v1811_v13  ;;  %922 = vperm.xlu1 %1805, %v868_v29  }
  0x32   : > { %1668 = vmatmul.mubr.msk.bf16.gmra.mrb[4].mxu0 %vm636_vm1, %v1812_v14  ;;  %1691 = vmatprep.mubr.msk.bf16.mxu1 %vm636_vm1, %v1813_v15 }
  0x33   : > { %1671 = vmatprep.mubr.msk.bf16.mxu0 %vm636_vm1, %v1814_v18 }
  0x34   : > { %917 = vperm.xlu0 %1804, %v867_v31  }
  0x35   : > { %932 = vperm.xlu1 %1805, %v870_v34  }
  0x38   : > { %927 = vperm.xlu0 %1804, %v869_v35  }
  0x39   : > { %1692 = vmatmul.mubr.msk.bf16.gmra.mrb[8].mxu1 %vm636_vm1, %v1815_v22  ;;  %942 = vperm.xlu1 %1805, %v872_v36  }
  0x3a   : > { %1672 = vmatmul.mubr.msk.bf16.gmra.mrb[8].mxu0 %vm636_vm1, %v1816_v24  ;;  %1695 = vmatprep.mubr.msk.bf16.mxu1 %vm636_vm1, %v1817_v25 }
  0x3b   : > { %1675 = vmatprep.mubr.msk.bf16.mxu0 %vm636_vm1, %v1818_v26 }
  0x3c   : > { %937 = vperm.xlu0 %1804, %v871_v38  }
  0x3d   : > { %523 = vperm.xlu1 %1805, %v501_v39  }
  0x40   : > { %518 = vperm.xlu0 %1804, %v500_v40  }
  0x41   : > { %1696 = vmatmul.mubr.msk.bf16.gmra.mrb[12].mxu1 %vm636_vm1, %v1819_v30  ;;  %952 = vperm.xlu1 %1805, %v874_v41  }
  0x42   : > { %1676 = vmatmul.mubr.msk.bf16.gmra.mrb[12].mxu0 %vm636_vm1, %v1820_v32  ;;  %1699 = vmatprep.mubr.msk.bf16.mxu1 %vm636_vm1, %v1821_v33 }
  0x44   : > { %947 = vperm.xlu0 %1804, %v873_v42  }
  0x45   : > { %533 = vperm.xlu1 %1805, %v503_v43  }
  0x48   : > { %528 = vperm.xlu0 %1804, %v502_v44  }
  0x49   : > { %1700 = vmatmul.mubr.msk.bf16.gmra.mrb[16].mxu1 %vm636_vm1, %v1822_v37  ;;  %543 = vperm.xlu1 %1805, %v505_v45  }
  0x4a   : > { %1735 = vmatprep.mubr.msk.bf16.mxu1 %vm1968_vm0, %v1967_v1 }
  0x4c   : > { %538 = vperm.xlu0 %1804, %v504_v46  }
  0x4d   : > { %553 = vperm.xlu1 %1805, %v507_v47  }
  0x50   : > { %548 = vperm.xlu0 %1804, %v506_v48  }
  0x51   : > { %563 = vperm.xlu1 %1805, %v509_v49  }
  0x54   : > { %558 = vperm.xlu0 %1804, %v508_v50  }
  0x55   : > { %573 = vperm.xlu1 %1805, %v511_v51  }
  0x58   : > { %568 = vperm.xlu0 %1804, %v510_v52  }
  0x59   : > { %583 = vperm.xlu1 %1805, %v513_v53  }
  0x5c   : > { %578 = vperm.xlu0 %1804, %v512_v54  }
  0x5d   : > { %593 = vperm.xlu1 %1805, %v515_v55  }
  0x60   : > { %588 = vperm.xlu0 %1804, %v514_v56  }
  0xa0   : > { %v888_v57 = vpop.permute.xlu1 %887 }
  0xa1   : > { %v878_v58 = vpop.permute.xlu0 %877 }
  0xa4   : > { %v893_v59 = vpop.permute.xlu1 %892 }
  0xa7   : > { %v883_v60 = vpop.permute.xlu0 %882 }
  0xa8   : > { %v2274_v61 = vpop.permute.xlu1 %902 }
  0xab   : > { %v2276_v62 = vpop.permute.xlu0 %897 }
  0xac   : > { %v2278_v63 = vpop.permute.xlu1 %912 }
  0xaf   : > { %v2280_v0 = vpop.permute.xlu0 %907 }
  0xb0   : > { %v2282_v2 = vpop.permute.xlu1 %922 }
  0xb3   : > { %v2284_v3 = vpop.permute.xlu0 %917 }
  0xb4   : > { %v2286_v4 = vpop.permute.xlu1 %932 }
  0xb7   : > { %v2288_v5 = vpop.permute.xlu0 %927 }
  0xb8   : > { %v2290_v6 = vpop.permute.xlu1 %942 }
  0xbb   : > { %v2292_v7 = vpop.permute.xlu0 %937 }
  0xbc   : > { %v524_v8 = vpop.permute.xlu1 %523 }
  0xbf   : > { %v519_v9 = vpop.permute.xlu0 %518 }
  0xc0   : > { %v2294_v10 = vpop.permute.xlu1 %952 }
  0xc3   : > { %v2296_v11 = vpop.permute.xlu0 %947 }
  0xc4   : > { %v534_v12 = vpop.permute.xlu1 %533 }
  0xc7   : > { %v529_v13 = vpop.permute.xlu0 %528 }
  0xc8   : > { %v544_v14 = vpop.permute.xlu1 %543 }
  0xcb   : > { %v539_v15 = vpop.permute.xlu0 %538 }
  0xcc   : > { %v554_v16 = vpop.permute.xlu1 %553 }
  0xcf   : > { %v549_v17 = vpop.permute.xlu0 %548 }
  0xd0   : > { %v2298_v18 = vpop.permute.xlu1 %563 }
  0xd3   : > { %v2300_v19 = vpop.permute.xlu0 %558 }
  0xd4   : > { %v574_v33 = vpop.permute.xlu1 %573 }
  0xd7   : > { %v569_v35 = vpop.permute.xlu0 %568 }
  0xd8   : > { %v584_v55 = vpop.permute.xlu1 %583 }
  0xfc   : > { %v2302_v20 = vpop.f32.mrb[0].mxu1 }
  0xfd   : > { %v1665_v21 = vpop.f32.mrb[0].mxu0  ;;  %v1683_v22 = vpop.f32.mrb[1].mxu1 }
  0xfe   : > { %v704_v23 = vadd.f32 %v1665_v21, %v529_v13  ;;  %v695_v24 = vpop.f32.mrb[1].mxu0  ;;  %v2304_v25 = vpop.f32.mrb[2].mxu1 }
  0xff   : > { %v696_v26 = vadd.f32 %v695_v24, %v519_v9  ;;  %v1666_v27 = vpop.f32.mrb[2].mxu0  ;;  %v1684_v28 = vpop.f32.mrb[3].mxu1 }
 0x100   : > { %v707_v29 = vadd.f32 %v1666_v27, %v534_v12  ;;  %v698_v30 = vpop.f32.mrb[3].mxu0 }
 0x101   : > { %v699_v31 = vadd.f32 %v698_v30, %v524_v8  ;;  %v579_v8 = vpop.permute.xlu0 %578 }
 0x102   : > { %v822_v32 = vpack.c.bf16 %v707_v29, %v704_v23 }
 0x103   : > { %v821_v34 = vpack.c.bf16 %v699_v31, %v696_v26 }
 0x104   : > { %831 = vst.msk [vmem:[#allocation2 + $0x8] sm:$0xff] %vm829_vm2, %v822_v32  ;;  %v1689_v36 = vpop.f32.mrb[4].mxu1 }
 0x105   : > { %830 = vst.msk [vmem:[#allocation2] sm:$0xff] %vm829_vm2, %v821_v34  ;;  %v1669_v37 = vpop.f32.mrb[4].mxu0  ;;  %v1054_v38 = vpop.f32.mrb[5].mxu1  ;;  %v1063_v41 = vadd.f32 %v1689_v36, %v888_v57 }
 0x106   : > { %v711_v39 = vpop.f32.mrb[5].mxu0  ;;  %v1690_v40 = vpop.f32.mrb[6].mxu1  ;;  %v720_v45 = vadd.f32 %v1669_v37, %v549_v17  ;;  %v1055_v46 = vadd.f32 %v1054_v38, %v878_v58 }
 0x107   : > { %v1066_v42 = vadd.f32 %v1690_v40, %v893_v59  ;;  %v1670_v43 = vpop.f32.mrb[6].mxu0  ;;  %v1057_v44 = vpop.f32.mrb[7].mxu1  ;;  %v712_v50 = vadd.f32 %v711_v39, %v539_v15 }
 0x108   : > { %v723_v47 = vadd.f32 %v1670_v43, %v554_v16  ;;  %v1058_v48 = vadd.f32 %v1057_v44, %v883_v60  ;;  %v714_v49 = vpop.f32.mrb[7].mxu0  ;;  %v589_v32 = vpop.permute.xlu0 %588 }
 0x109   : > { %v1118_v51 = vpack.c.bf16 %v1066_v42, %v1063_v41  ;;  %v715_v52 = vadd.f32 %v714_v49, %v544_v14 }
 0x10a   : > { %v824_v53 = vpack.c.bf16 %v723_v47, %v720_v45  ;;  %v1117_v54 = vpack.c.bf16 %v1058_v48, %v1055_v46 }
 0x10b   : > { %v823_v56 = vpack.c.bf16 %v715_v52, %v712_v50  ;;  %v1126_v59 = vld [vmem:[#allocation2 + $0x8] sm:$0xff] }
 0x10c   : > { %833 = vst.msk [vmem:[#allocation2 + $0x18] sm:$0xff] %vm829_vm2, %v824_v53  ;;  %v1693_v9 = vpop.f32.mrb[8].mxu1  ;;  %1133 = vxpose.xlu0.c.b16.start [1/8] (narrow) %v1117_v54, 64  ;;  %v1125_v57 = vld [vmem:[#allocation2] sm:$0xff] }
 0x10d   : > { %832 = vst.msk [vmem:[#allocation2 + $0x10] sm:$0xff] %vm829_vm2, %v823_v56  ;;  %v1673_v58 = vpop.f32.mrb[8].mxu0  ;;  %v1070_v12 = vpop.f32.mrb[9].mxu1  ;;  %1703 = vmatprep.subr.bf16.mxu0 %v1125_v57  ;;  %v1079_v14 = vadd.f32 %v1693_v9, %v2280_v0 }
 0x10e   : > { %v727_v60 = vpop.f32.mrb[9].mxu0  ;;  %v1694_v13 = vpop.f32.mrb[10].mxu1  ;;  %1704 = vmatpush3.bf16.msra.mxu0 %v1125_v57  ;;  %v736_v21 = vadd.f32 %v1673_v58, %v569_v35  ;;  %v1071_v22 = vadd.f32 %v1070_v12, %v2276_v62 }
 0x10f   : > { %v1082_v15 = vadd.f32 %v1694_v13, %v2278_v63  ;;  %v1674_v16 = vpop.f32.mrb[10].mxu0  ;;  %v1073_v17 = vpop.f32.mrb[11].mxu1  ;;  %1705 = vmatprep.subr.bf16.mxu0 %v1126_v59  ;;  %v728_v27 = vadd.f32 %v727_v60, %v2300_v19 }
 0x110   : > { %v739_v23 = vadd.f32 %v1674_v16, %v574_v33  ;;  %v1074_v24 = vadd.f32 %v1073_v17, %v2274_v61  ;;  %1134 = vxpose.xlu0.c.b16.cont [2/8] (narrow) %v1118_v51, 64  ;;  %v730_v26 = vpop.f32.mrb[11].mxu0  ;;  %v594_v63 = vpop.permute.xlu1 %593 }
 0x111   : > { %v1120_v28 = vpack.c.bf16 %v1082_v15, %v1079_v14  ;;  %v731_v29 = vadd.f32 %v730_v26, %v2298_v18 }
 0x112   : > { %v826_v30 = vpack.c.bf16 %v739_v23, %v736_v21  ;;  %v1119_v0 = vpack.c.bf16 %v1074_v24, %v1071_v22  ;;  %1706 = vmatpush3.bf16.msra.mxu0 %v1126_v59 }
 0x113   : > { %v825_v31 = vpack.c.bf16 %v731_v29, %v728_v27  ;;  %v1128_v18 = vld [vmem:[#allocation2 + $0x18] sm:$0xff] }
 0x114   : > { %835 = vst.msk [vmem:[#allocation2 + $0x28] sm:$0xff] %vm829_vm2, %v826_v30  ;;  %v1697_v34 = vpop.f32.mrb[12].mxu1  ;;  %1135 = vxpose.xlu0.c.b16.cont [3/8] (narrow) %v1119_v0, 64  ;;  %v1127_v62 = vld [vmem:[#allocation2 + $0x10] sm:$0xff] }
 0x115   : > { %834 = vst.msk [vmem:[#allocation2 + $0x20] sm:$0xff] %vm829_vm2, %v825_v31  ;;  %v1677_v61 = vpop.f32.mrb[12].mxu0  ;;  %v1086_v33 = vpop.f32.mrb[13].mxu1  ;;  %1707 = vmatprep.subr.bf16.mxu0 %v1127_v62  ;;  %v1095_v36 = vadd.f32 %v1697_v34, %v2288_v5 }
 0x116   : > { %v743_v19 = vpop.f32.mrb[13].mxu0  ;;  %v1698_v35 = vpop.f32.mrb[14].mxu1  ;;  %1708 = vmatpush3.bf16.msra.mxu0 %v1127_v62  ;;  %v752_v40 = vadd.f32 %v1677_v61, %v589_v32  ;;  %v1087_v41 = vadd.f32 %v1086_v33, %v2284_v3 }
 0x117   : > { %v1098_v37 = vadd.f32 %v1698_v35, %v2286_v4  ;;  %v1678_v38 = vpop.f32.mrb[14].mxu0  ;;  %v1089_v39 = vpop.f32.mrb[15].mxu1  ;;  %1709 = vmatprep.subr.bf16.mxu0 %v1128_v18  ;;  %v744_v45 = vadd.f32 %v743_v19, %v579_v8 }
 0x118   : > { %v755_v42 = vadd.f32 %v1678_v38, %v594_v63  ;;  %v1090_v43 = vadd.f32 %v1089_v39, %v2282_v2  ;;  %1136 = vxpose.xlu0.c.b16.cont [4/8] (narrow) %v1120_v28, 64  ;;  %v746_v44 = vpop.f32.mrb[15].mxu0 }
 0x119   : > { %v1122_v46 = vpack.c.bf16 %v1098_v37, %v1095_v36  ;;  %v747_v47 = vadd.f32 %v746_v44, %v584_v55 }
 0x11a   : > { %v828_v48 = vpack.c.bf16 %v755_v42, %v752_v40  ;;  %v1121_v49 = vpack.c.bf16 %v1090_v43, %v1087_v41  ;;  %1710 = vmatpush3.bf16.msra.mxu0 %v1128_v18 }
 0x11b   : > { %v827_v5 = vpack.c.bf16 %v747_v47, %v744_v45  ;;  %v1130_v2 = vld [vmem:[#allocation2 + $0x28] sm:$0xff] }
 0x11c   : > { %837 = vst.msk [vmem:[#allocation2 + $0x38] sm:$0xff] %vm829_vm2, %v828_v48  ;;  %v1701_v4 = vpop.f32.mrb[16].mxu1  ;;  %1137 = vxpose.xlu0.c.b16.cont [5/8] (narrow) %v1121_v49, 64  ;;  %v1129_v50 = vld [vmem:[#allocation2 + $0x20] sm:$0xff] }
 0x11d   : > { %836 = vst.msk [vmem:[#allocation2 + $0x30] sm:$0xff] %vm829_vm2, %v827_v5  ;;  %v1102_v3 = vpop.f32.mrb[17].mxu1  ;;  %1711 = vmatprep.subr.bf16.mxu0 %v1129_v50  ;;  %v1111_v52 = vadd.f32 %v1701_v4, %v2296_v11 }
 0x11e   : > { %v1702_v51 = vpop.f32.mrb[18].mxu1  ;;  %1712 = vmatpush3.bf16.msra.mxu0 %v1129_v50  ;;  %v1103_v55 = vadd.f32 %v1102_v3, %v2292_v7 }
 0x11f   : > { %v1114_v53 = vadd.f32 %v1702_v51, %v2294_v10  ;;  %v1105_v54 = vpop.f32.mrb[19].mxu1  ;;  %1713 = vmatprep.subr.bf16.mxu0 %v1130_v2 }
 0x120   : > { %v1106_v56 = vadd.f32 %v1105_v54, %v2290_v6  ;;  %1138 = vxpose.xlu0.c.b16.cont [6/8] (narrow) %v1122_v46, 64 }
 0x121   : > { %v1124_v8 = vpack.c.bf16 %v1114_v53, %v1111_v52 }
 0x122   : > { %v1123_v9 = vpack.c.bf16 %v1106_v56, %v1103_v55  ;;  %1714 = vmatpush3.bf16.msra.mxu0 %v1130_v2 }
 0x123   : > { %v1132_v59 = vld [vmem:[#allocation2 + $0x38] sm:$0xff] }
 0x124   : > { %1139 = vxpose.xlu0.c.b16.cont [7/8] (narrow) %v1123_v9, 64  ;;  %v1131_v57 = vld [vmem:[#allocation2 + $0x30] sm:$0xff] }
 0x125   : > { %1715 = vmatprep.subr.bf16.mxu0 %v1131_v57 }
 0x126   : > { %1716 = vmatpush3.bf16.msra.mxu0 %v1131_v57 }
 0x127   : > { %1717 = vmatprep.subr.bf16.mxu0 %v1132_v59 }
 0x128   : > { %1140 = vxpose.xlu0.c.b16.end [8/8] (narrow) %v1124_v8, 64 }
 0x12a   : > { %1718 = vmatpush3.bf16.msra.mxu0 %v1132_v59  ;;  %v761_v59 = vld [vmem:[%s2491_s8 + $0x8] sm:$0xff] }
 0x172   : > { %v1141_v11 = vpop.trf.xlu0 }
 0x173   : > { %1719 = vmatprep.mubr.bf16.mxu0 %v1141_v11  ;;  %v760_v11 = vld [vmem:[%s2491_s8] sm:$0xff] }
 0x176   : > { %v1142_v10 = vpop.trf.xlu0 }
 0x177   : > { %1720 = vmatmul.mubr.bf16.vlgmr.msra.gmra.mrb[16].mxu0 %v1142_v10 }
 0x17a   : > { %v1143_v58 = vpop.trf.xlu0 }
 0x17b   : > { %1723 = vmatprep.mubr.bf16.mxu0 %v1143_v58 }
 0x17e   : > { %v1144_v7 = vpop.trf.xlu0 }
 0x17f   : > { %1724 = vmatmul.mubr.bf16.gmra.mrb[20].mxu0 %v1144_v7 }
 0x24a   : > { %v1721_v6 = vpop.f32.mrb[16].mxu0 }
 0x24b   : > { %v1183_v12 = vpop.f32.mrb[17].mxu0  ;;  %v1221_v22 = vsel %vm829_vm2, %v1721_v6, -inf }
 0x24c   : > { %v1722_v60 = vpop.f32.mrb[18].mxu0  ;;  %v1215_v13 = vsel %vm829_vm2, %v1183_v12, -inf }
 0x24d   : > { %1216 = vmax.xlane.f32.xlu1 %v1215_v13  ;;  %v1186_v14 = vpop.f32.mrb[19].mxu0  ;;  %v1224_v26 = vsel %vm829_vm2, %v1722_v60, -inf }
 0x24e   : > { %v1218_v15 = vsel %vm829_vm2, %v1186_v14, -inf }
 0x251   : > { %1219 = vmax.xlane.f32.xlu1 %v1218_v15 }
 0x252   : > { %v1725_v16 = vpop.f32.mrb[20].mxu0 }
 0x253   : > { %v1199_v17 = vpop.f32.mrb[21].mxu0  ;;  %v1233_v29 = vsel %vm829_vm2, %v1725_v16, -inf }
 0x254   : > { %v1726_v21 = vpop.f32.mrb[22].mxu0  ;;  %v1227_v27 = vsel %vm829_vm2, %v1199_v17, -inf }
 0x255   : > { %1222 = vmax.xlane.f32.xlu1 %v1221_v22  ;;  %v1236_v23 = vsel %vm829_vm2, %v1726_v21, -inf  ;;  %v1202_v24 = vpop.f32.mrb[23].mxu0 }
 0x256   : > { %1237 = vmax.xlane.f32.xlu0 %v1236_v23  ;;  %v1230_v28 = vsel %vm829_vm2, %v1202_v24, -inf }
 0x259   : > { %1225 = vmax.xlane.f32.xlu1 %v1224_v26 }
 0x25d   : > { %1228 = vmax.xlane.f32.xlu1 %v1227_v27 }
 0x261   : > { %1231 = vmax.xlane.f32.xlu1 %v1230_v28 }
 0x265   : > { %1234 = vmax.xlane.f32.xlu1 %v1233_v29 }
 0x2da   : > { %v1217_v30 = vpop.xlane.xlu1 %1216 }
 0x2db   : > { %v1239_v63 = vsub.f32 %v1183_v12, %v1217_v30 }
 0x2dd   : > { %v1247_v61 = vmul.f32 1.442695, %v1239_v63 }
 0x2de   : > { %v1220_v0 = vpop.xlane.xlu1 %1219 }
 0x2df   : > { %v1240_v62 = vsub.f32 %v1186_v14, %v1220_v0 }
 0x2e1   : > { %v1249_v36 = vmul.f32 1.442695, %v1240_v62 }
 0x2e2   : > { %v1223_v31 = vpop.xlane.xlu1 %1222 }
 0x2e3   : > { %v1241_v32 = vsub.f32 %v1721_v6, %v1223_v31  ;;  %v1238_v34 = vpop.xlane.xlu0 %1237 }
 0x2e4   : > { %v1246_v19 = vsub.f32 %v1726_v21, %v1238_v34 }
 0x2e5   : > { %v1251_v33 = vmul.f32 1.442695, %v1241_v32 }
 0x2e6   : > { %v1226_v35 = vpop.xlane.xlu1 %1225  ;;  %v1261_v37 = vmul.f32 1.442695, %v1246_v19 }
 0x2e7   : > { %1823 = vpow2.f32 %v1251_v33  ;;  %v1242_v18 = vsub.f32 %v1722_v60, %v1226_v35 }
 0x2e8   : > { %1825 = vpow2.f32 %v1247_v61 }
 0x2e9   : > { %v1253_v38 = vmul.f32 1.442695, %v1242_v18 }
 0x2ea   : > { %v1229_v39 = vpop.xlane.xlu1 %1228 }
 0x2eb   : > { %1827 = vpow2.f32 %v1253_v38  ;;  %v1243_v43 = vsub.f32 %v1199_v17, %v1229_v39 }
 0x2ec   : > { %1829 = vpow2.f32 %v1249_v36 }
 0x2ed   : > { %1831 = vpow2.f32 %v1261_v37  ;;  %v1255_v5 = vmul.f32 1.442695, %v1243_v43 }
 0x2ee   : > { %v1232_v40 = vpop.xlane.xlu1 %1231 }
 0x2ef   : > { %v1244_v41 = vsub.f32 %v1202_v24, %v1232_v40 }
 0x2f1   : > { %v1824_v42 = vpop.eup %1823  ;;  %v1257_v44 = vmul.f32 1.442695, %v1244_v41 }
 0x2f2   : > { %v1235_v45 = vpop.xlane.xlu1 %1234  ;;  %v1269_v46 = vsel %vm829_vm2, %v1824_v42, 0.0  ;;  %v1826_v47 = vpop.eup %1825 }
 0x2f3   : > { %1833 = vpow2.f32 %v1257_v44  ;;  %v1245_v48 = vsub.f32 %v1725_v16, %v1235_v45  ;;  %1270 = vadd.xlane.f32.xlu1 %v1269_v46  ;;  %v1263_v51 = vsel %vm829_vm2, %v1826_v47, 0.0 }
 0x2f5   : > { %v1828_v49 = vpop.eup %1827  ;;  %v1259_v4 = vmul.f32 1.442695, %v1245_v48 }
 0x2f6   : > { %v1830_v50 = vpop.eup %1829  ;;  %v1272_v3 = vsel %vm829_vm2, %v1828_v49, 0.0 }
 0x2f7   : > { %v1832_v2 = vpop.eup %1831  ;;  %1835 = vpow2.f32 %v1259_v4  ;;  %1273 = vadd.xlane.f32.xlu0 %v1272_v3  ;;  %1264 = vadd.xlane.f32.xlu1 %v1263_v51  ;;  %v1266_v53 = vsel %vm829_vm2, %v1830_v50, 0.0 }
 0x2f8   : > { %1837 = vpow2.f32 %v1255_v5  ;;  %v1284_v52 = vsel %vm829_vm2, %v1832_v2, 0.0 }
 0x2fb   : > { %1285 = vadd.xlane.f32.xlu0 %v1284_v52  ;;  %1267 = vadd.xlane.f32.xlu1 %v1266_v53 }
 0x2fd   : > { %v1834_v54 = vpop.eup %1833 }
 0x2fe   : > { %v1278_v55 = vsel %vm829_vm2, %v1834_v54, 0.0 }
 0x2ff   : > { %1279 = vadd.xlane.f32.xlu0 %v1278_v55 }
 0x301   : > { %v1836_v56 = vpop.eup %1835 }
 0x302   : > { %v1281_v8 = vsel %vm829_vm2, %v1836_v56, 0.0  ;;  %v1838_v9 = vpop.eup %1837 }
 0x303   : > { %1282 = vadd.xlane.f32.xlu1 %v1281_v8  ;;  %v1275_v57 = vsel %vm829_vm2, %v1838_v9, 0.0 }
 0x307   : > { %1276 = vadd.xlane.f32.xlu1 %v1275_v57 }
 0x315   : > { %769 = vperm.xlu0 %1804, %v761_v59  }
 0x318   : > { %764 = vperm.xlu1 %1805, %v760_v11  }
 0x380   : > { %v1271_v10 = vpop.xlane.xlu1 %1270 }
 0x381   : > { %1839 = vrcp.f32 %v1271_v10 }
 0x384   : > { %v1274_v58 = vpop.xlane.xlu0 %1273  ;;  %v1265_v7 = vpop.xlane.xlu1 %1264 }
 0x385   : > { %1841 = vrcp.f32 %v1274_v58 }
 0x386   : > { %1843 = vrcp.f32 %v1265_v7 }
 0x388   : > { %v1286_v6 = vpop.xlane.xlu0 %1285  ;;  %v1268_v12 = vpop.xlane.xlu1 %1267 }
 0x389   : > { %1845 = vrcp.f32 %v1286_v6 }
 0x38a   : > { %1847 = vrcp.f32 %v1268_v12 }
 0x38b   : > { %v1840_v60 = vpop.eup %1839 }
 0x38c   : > { %v1280_v13 = vpop.xlane.xlu0 %1279  ;;  %v1297_v14 = vmul.f32 %v1840_v60, %v1824_v42 }
 0x38d   : > { %1849 = vrcp.f32 %v1280_v13 }
 0x38e   : > { %1305 = vst.msk [vmem:[%s2354_s29 + $0x10] sm:$0xff] %vm829_vm2, %v1297_v14 }
 0x38f   : > { %v1842_v15 = vpop.eup %1841 }
 0x390   : > { %v1844_v16 = vpop.eup %1843  ;;  %v1283_v17 = vpop.xlane.xlu1 %1282  ;;  %v1298_v21 = vmul.f32 %v1842_v15, %v1828_v49 }
 0x391   : > { %1851 = vrcp.f32 %v1283_v17  ;;  %v1295_v22 = vmul.f32 %v1844_v16, %v1826_v47 }
 0x392   : > { %1306 = vst.msk [vmem:[%s2354_s29 + $0x18] sm:$0xff] %vm829_vm2, %v1298_v21  ;;  %v1313_v35 = vpack.c.bf16 %v1298_v21, %v1297_v14 }
 0x393   : > { %v1846_v23 = vpop.eup %1845  ;;  %1303 = vst.msk [vmem:[%s2354_s29] sm:$0xff] %vm829_vm2, %v1295_v22 }
 0x394   : > { %v1848_v24 = vpop.eup %1847  ;;  %v1277_v26 = vpop.xlane.xlu1 %1276  ;;  %v1302_v27 = vmul.f32 %v1846_v23, %v1832_v2 }
 0x395   : > { %1853 = vrcp.f32 %v1277_v26  ;;  %v1296_v28 = vmul.f32 %v1848_v24, %v1830_v50  ;;  %v770_v29 = vpop.permute.xlu0 %769 }
 0x396   : > { %1310 = vst.msk [vmem:[%s2354_s29 + $0x38] sm:$0xff] %vm829_vm2, %v1302_v27  ;;  %v818_v32 = vadd.f32 %v2304_v25, %v770_v29 }
 0x397   : > { %v1850_v30 = vpop.eup %1849  ;;  %1304 = vst.msk [vmem:[%s2354_s29 + $0x8] sm:$0xff] %vm829_vm2, %v1296_v28  ;;  %v1312_v0 = vpack.c.bf16 %v1296_v28, %v1295_v22 }
 0x398   : > { %v765_v63 = vpop.permute.xlu1 %764  ;;  %v1300_v31 = vmul.f32 %v1850_v30, %v1834_v54 }
 0x399   : > { %v815_v34 = vadd.f32 %v2302_v20, %v765_v63  ;;  %v1320_v62 = vsel %vm829_vm2, %v1312_v0, 0  ;;  %v1323_v20 = vsel %vm829_vm2, %v1313_v35, 0 }
 0x39a   : > { %1728 = vmatpush3.bf16.xpose.msra.mxu1 %v1320_v62  ;;  %1308 = vst.msk [vmem:[%s2354_s29 + $0x28] sm:$0xff] %vm829_vm2, %v1300_v31 }
 0x39b   : > { %v1852_v61 = vpop.eup %1851  ;;  %v838_v33 = vpack.c.bf16 %v818_v32, %v815_v34  ;;  %1729 = vmatprep.subr.bf16.mxu1 %v1967_v1 }
 0x39c   : > { %v1301_v19 = vmul.f32 %v1852_v61, %v1836_v56 }
 0x39d   : > { %839 = vst.msk [vmem:[#allocation3] sm:$0xff] %vm829_vm2, %v838_v33 }
 0x39e   : > { %1309 = vst.msk [vmem:[%s2354_s29 + $0x30] sm:$0xff] %vm829_vm2, %v1301_v19  ;;  %v1315_v38 = vpack.c.bf16 %v1302_v27, %v1301_v19 }
 0x39f   : > { %v1854_v25 = vpop.eup %1853 }
 0x3a0   : > { %v1299_v18 = vmul.f32 %v1854_v25, %v1838_v9  ;;  %v1329_v39 = vsel %vm829_vm2, %v1315_v38, 0 }
 0x3a2   : > { %1730 = vmatpush3.bf16.xpose.msra.mxu1 %v1323_v20  ;;  %1307 = vst.msk [vmem:[%s2354_s29 + $0x20] sm:$0xff] %vm829_vm2, %v1299_v18  ;;  %v1314_v36 = vpack.c.bf16 %v1300_v31, %v1299_v18 }
 0x3a3   : > { %1731 = vmatprep.subr.bf16.mxu1 %v1967_v1 }
 0x3a4   : > { %v1326_v37 = vsel %vm829_vm2, %v1314_v36, 0  ;;  %v1311_v40 = vld [vmem:[#allocation3] sm:$0xff] }
 0x3aa   : > { %1732 = vmatpush3.bf16.xpose.msra.mxu1 %v1326_v37 }
 0x3ab   : > { %1733 = vmatprep.subr.bf16.mxu1 %v1967_v1 }
 0x3b2   : > { %1734 = vmatpush3.bf16.xpose.msra.mxu1 %v1329_v39 }
 0x3b9   : > { %1736 = vmatmul.mubr.msk.bf16.vlgmr.msra.gmra.mrb[20].mxu1 %vm829_vm2, %v1311_v40 }
 0x3ba   : > { %1868 = shalt.err (!%p1865_p5)
}
 0x3bb   : > { %s1869_s29 = scalar_lea.hbm %s2387_s17, 1024  ;;  %s1873_s15 = scalar_lea.hbm %s2494_s11, 2048 }
 0x3bc   : > { %p1870_p6 = scmp.ne.s32.totalorder %s2387_s17, %s1869_s29  ;;  %p1874_p10 = scmp.lt.u32.totalorder %s2387_s17, %s2494_s11 }
 0x3bd   : > { %p1875_p11 = scmp.lt.u32.totalorder %s1873_s15, %s1869_s29  ;;  %p1877_p13 = scmp.lt.u32.totalorder %s1869_s29, %s2387_s17 }
 0x3be   : > { %p1871_p7 = pnand %p1870_p6, %p2077_p4 }
 0x3bf   : > { %p1876_p12 = por %p1875_p11, %p1874_p10 }
 0x3c0   : > { %p1872_p9 = pneg %p1871_p7 }
 0x3c1   : > { %p1878_p0 = por %p1877_p13, %p1876_p12 }
 0x3c3   : > { %p1879_p1 = pnand %p1878_p0, %p1872_p9 }
 0x3c5   : > { %1882 = shalt.err (!%p1879_p1)
}
 0x3c6   : > { %s1971_s25 = smov 128   ;;  %s1972_s7 = smov 8  }
 0x3c7   : > { %1740 = dma.vmem_to_hbm [thread:$0]  (%p2077_p4), %s2390_s18, 1024, %s2387_s17, %s1388_s0, %s1971_s25, %s1971_s25, %s1972_s7  }
 0x3c8   : > { %s1372_s13 = sld [smem:[#allocation4]]  ;;  %s1568_s29 = sshll.u32 %s2351_s2, 4 }
 0x3c9   : > { %s466_s9 = scalar_lea.vmem %s2484_s1, %s2101_s16  ;;  %s446_s27 = scalar_lea.vmem [#allocation5], %s1568_s29 }
 0x3ca   : > { %v1376_v42 = vld [vmem:[%s466_s9] sm:$0xff]  ;;  %s1402_s3 = sshll.u32 %s446_s27, 4  ;;  %v1377_v46 = vld [vmem:[%s466_s9 + $0x8] sm:$0xff]  ;;  %s1622_s4 = sshll.u32 %s1957_s22, 8  ;;  %s2431_s3 = int_to_ptr.vmem [resolvable:$true] %s1402_s3 }
 0x3cb   : > { %s2429_s18 = scalar_lea.hbm %s2493_s10, %s1622_s4  ;;  %s1383_s0 = scalar_lea.sflag [#allocation6], %s2351_s2 }
 0x3cc   : > { %s1883_s22 = scalar_lea.vmem %s2431_s3, 256 }
 0x3cd   : > { %p1884_p2 = scmp.ne.s32.totalorder %s2431_s3, %s1883_s22 }
 0x3ce   : > { %v1373_v1 = vstv %s1372_s13  ;;  %s1973_s13 = smov [#allocation5]  }
 0x3cf   : > { %p1885_p3 = pnand %p1884_p2, %p2077_p4  ;;  %s1887_s29 = sshll.u32 %s1973_s13, 4  ;;  %s1888_s29 = int_to_ptr.vmem [resolvable:$false] %s1887_s29 }
 0x3d0   : > { %s1889_s14 = scalar_lea.vmem %s1888_s29, 512  ;;  %p1890_p6 = scmp.lt.s32.totalorder %s2431_s3, %s1888_s29 }
 0x3d1   : > { %p1886_p5 = pneg %p1885_p3  ;;  %p1891_p7 = scmp.lt.s32.totalorder %s1889_s14, %s1883_s22 }
 0x3d3   : > { %p1892_p9 = por %p1891_p7, %p1890_p6 }
 0x3d5   : > { %p1893_p10 = pnand %p1892_p9, %p1886_p5 }
 0x48c   : > { %v1365_v41 = vpop.f32.mrb[20].mxu1 }
 0x48d   : > { %v1374_v43 = vmul.f32 %v1373_v1, %v1365_v41  ;;  %v1737_v44 = vpop.f32.mrb[21].mxu1 }
 0x48e   : > { %v1368_v45 = vpop.f32.mrb[22].mxu1 }
 0x48f   : > { %v1378_v47 = vadd.f32 %v1376_v42, %v1374_v43  ;;  %v1375_v48 = vmul.f32 %v1373_v1, %v1368_v45  ;;  %v1738_v49 = vpop.f32.mrb[23].mxu1 }
 0x491   : > { %1380 = vst.msk [vmem:[%s446_s27] sm:$0xff] %vm829_vm2, %v1378_v47  ;;  %v1379_v5 = vadd.f32 %v1377_v46, %v1375_v48 }
 0x493   : > { %1381 = vst.msk [vmem:[%s446_s27 + $0x8] sm:$0xff] %vm829_vm2, %v1379_v5 }
 0x494   : > { %1896 = shalt.err (!%p1893_p10)
}
 0x495   : > { %s1897_s4 = scalar_lea.hbm %s2429_s18, 256  ;;  %s1901_s27 = scalar_lea.hbm %s2493_s10, 512 }
 0x496   : > { %p1898_p11 = scmp.ne.s32.totalorder %s2429_s18, %s1897_s4  ;;  %p1902_p0 = scmp.lt.u32.totalorder %s2429_s18, %s2493_s10 }
 0x497   : > { %p1903_p1 = scmp.lt.u32.totalorder %s1901_s27, %s1897_s4  ;;  %p1905_p3 = scmp.lt.u32.totalorder %s1897_s4, %s2429_s18 }
 0x498   : > { %p1899_p12 = pnand %p1898_p11, %p2077_p4 }
 0x499   : > { %p1904_p2 = por %p1903_p1, %p1902_p0 }
 0x49a   : > { %p1900_p13 = pneg %p1899_p12 }
 0x49b   : > { %p1906_p5 = por %p1905_p3, %p1904_p2 }
 0x49d   : > { %p1907_p6 = pnand %p1906_p5, %p1900_p13 }
 0x49f   : > { %1910 = shalt.err (!%p1907_p6)
}
 0x4a0   : > { %1739 = dma.vmem_to_hbm [thread:$0]  (%p2077_p4), %s2431_s3, 256, %s2429_s18, %s1383_s0, %s1971_s25, %s1971_s25, %s1972_s7  }
 0x4a1 PF: > { %p1750_p7 = scmp.ge.s32.totalorder %s1965_s24, 2  ;;  %s1435_s22 = sand.u32 1, %s1945_s19  }
 0x4a2   : > { %s1436_s13 = scalar_lea.sflag [#allocation6], %s1435_s22 }
 0x4a3   : > { %p1744_p9 = pnand %p1750_p7, %p2084_p8 }
 0x4a5   : > { %1936 = dma.done.wait (!%p1744_p9), %s1436_s13, 256  }
 0x4a6   : > { %1938 = vsyncadd (!%p1744_p9), %s1436_s13, 4294967040  ;;  %s1445_s28 = scalar_lea.sflag [#allocation8], %s1435_s22 }
 0x4a7   : > { %1940 = dma.done.wait (!%p1744_p9), %s1445_s28, 1024  }
 0x4a8   : > { %1942 = vsyncadd (!%p1744_p9), %s1445_s28, 4294966272  ;;  %s29_s24 = sadd.s32 1, %s1965_s24   ;;  %s2507_s19 = smov %s1949_s20 }
 0x4a9   : > { %p26_p10 = scmp.ge.s32.totalorder %s29_s24, 4   ;;  %s2508_s20 = smov %s1953_s21 }
 0x4aa   : > { %s2509_s21 = smov %s2090_s12  ;;  %s2510_s22 = smov %s1961_s23 }
 0x4ab   : > { %s2511_s23 = smov %s2513_s26  ;;  %28 = sbr.rel (!%p26_p10) target bundleno = 13 (0xd), region = 122 }
 0x4b2   :  { %1450 = vsyncpa [#allocation6], 1 }
 0x4b3   :  { %1452 = vsyncpa [#allocation6 + $0x1], 1 }
 0x4b4   :  { %1453 = vsyncpa [#allocation8], 1 }
 0x4b5   :  { %1455 = vsyncpa [#allocation8 + $0x1], 1 }

</bundles_post_ra>
